<compile_context>
chip_gen: v7x
topology: tpu7x:2x2x1
jax: 0.10.0
libtpu: 0.0.40
codegen_flags: <defaults>
</compile_context>

<pallas_src>
import functools

import jax
import jax.numpy as jnp
from jax.experimental import pallas as pl
from jax.experimental.pallas import tpu as pltpu

_LANE = 128              # TPU lane width (last-dim granularity)
_SUBLANE = 8             # TPU sublane granularity (second-to-last dim)
_SINGLE_BLOCK_ROWS = 256 # batches up to this run as one block (grid=(1,))
_LARGE_TILE_ROWS = 1024  # cap for very large eval batches -> more tiles


def _round_up(n, m):
    return -(-n // m) * m


def _pick_hidden_dtype():
    """bf16 epilogue on chips with a bf16 VALU (v6e/v7x); f32 on v5 & older."""
    try:
        kind = jax.devices()[0].device_kind.lower()
    except Exception:
        return jnp.float32
    if any(v in kind for v in ("v2", "v3", "v4", "v5")):
        return jnp.float32
    return jnp.bfloat16


_HIDDEN_DTYPE = _pick_hidden_dtype()


# ---------------------------------------------------------------------------
# Kernel: one batch tile, all four matmuls + ReLUs fused, weights resident.
# ---------------------------------------------------------------------------
def _qnet_kernel(x_ref, w1_ref, b1_ref, w2_ref, b2_ref,
                 w3_ref, b3_ref, w4_ref, b4_ref, o_ref, *, hidden_dtype):
    # MXU accumulates in f32 (preferred_element_type).  The bias-add / ReLU
    # epilogue runs in `hidden_dtype` (bf16 on v6e/v7x to halve live
    # activation bytes, f32 on v5e which has no bf16 VALU); the activation is
    # always bf16 as the next matmul's LHS.
    def layer(h, w_ref, b_ref):
        y = jnp.dot(h, w_ref[...], preferred_element_type=jnp.float32)
        y = y.astype(hidden_dtype) + b_ref[...].astype(hidden_dtype)
        return jnp.maximum(y, 0.0).astype(jnp.bfloat16)

    h = layer(x_ref[...], w1_ref, b1_ref)
    h = layer(h, w2_ref, b2_ref)
    h = layer(h, w3_ref, b3_ref)
    # Final layer: bias-add and Q-value output stay f32 (TD-target precision).
    o_ref[...] = (jnp.dot(h, w4_ref[...], preferred_element_type=jnp.float32)
                  + b4_ref[...]).astype(o_ref.dtype)


# ---------------------------------------------------------------------------
# One-time parameter packing (hoisted out of the per-call path).
# ---------------------------------------------------------------------------
def prepare_params(params, state_dim, action_dim):
    """Pad to lane multiples, cast weights to bf16, reshape biases to (1, N).

    Run once per parameter update; `qnetwork_forward` then only pads the
    activations and issues the pallas_call.
    """
    pad_in = _round_up(max(state_dim, 1), _LANE)
    pad_out = _round_up(max(action_dim, 1), _LANE)

    def pad2(a, rows, cols):
        r, c = a.shape
        return jnp.pad(a, ((0, rows - r), (0, cols - c)))

    return {
        "w1": pad2(params["w1"], pad_in, 256).astype(jnp.bfloat16),
        "b1": params["b1"].reshape(1, -1).astype(jnp.float32),
        "w2": params["w2"].astype(jnp.bfloat16),
        "b2": params["b2"].reshape(1, -1).astype(jnp.float32),
        "w3": params["w3"].astype(jnp.bfloat16),
        "b3": params["b3"].reshape(1, -1).astype(jnp.float32),
        "w4": pad2(params["w4"], 128, pad_out).astype(jnp.bfloat16),
        "b4": pad2(params["b4"].reshape(1, -1), 1, pad_out).astype(jnp.float32),
    }


# ---------------------------------------------------------------------------
# Forward pass (jitted: pad-x + pallas_call + output slice = one dispatch).
# ---------------------------------------------------------------------------
@functools.partial(jax.jit, static_argnames=("action_dim",))
def qnetwork_forward(x, prepared, *, action_dim):
    """x: (batch, state_dim) float32. prepared: output of prepare_params."""
    batch, state_dim = x.shape
    pad_in = prepared["w1"].shape[0]
    pad_out = prepared["w4"].shape[1]

    # Batch tiling: single block for small/actor batches (no per-step
    # overhead), otherwise split into equal, sublane-aligned tiles with (near)
    # zero padding.  Two tiles also let v7x's two TensorCores split the batch.
    if batch <= _SINGLE_BLOCK_ROWS:
        num_tiles = 1
    else:
        num_tiles = max(2, -(-batch // _LARGE_TILE_ROWS))
    tile_b = _round_up(-(-batch // num_tiles), _SUBLANE)
    pad_b = tile_b * num_tiles
    grid = (num_tiles,)

    x_p = jnp.pad(
        x, ((0, pad_b - batch), (0, pad_in - state_dim))).astype(jnp.bfloat16)

    def const_spec(shape):
        # Full-array block, constant index map -> fetched once, VMEM-resident.
        # Single-buffered: the default second buffer would never be used.
        return pl.BlockSpec(shape, lambda i: (0, 0),
                            pipeline_mode=pl.Buffered(1))

    kernel = functools.partial(_qnet_kernel, hidden_dtype=_HIDDEN_DTYPE)

    out_padded = pl.pallas_call(
        kernel,
        out_shape=jax.ShapeDtypeStruct((pad_b, pad_out), jnp.float32),
        grid=grid,
        in_specs=[
            pl.BlockSpec((tile_b, pad_in), lambda i: (i, 0)),   # x (streamed)
            const_spec((pad_in, 256)), const_spec((1, 256)),    # fc1
            const_spec((256, 256)),    const_spec((1, 256)),    # fc2
            const_spec((256, 128)),    const_spec((1, 128)),    # fc3
            const_spec((128, pad_out)), const_spec((1, pad_out)),  # fc4
        ],
        # Lane-dense (128-wide) output block: keep it; narrower blocks force
        # masked partial stores.
        out_specs=pl.BlockSpec((tile_b, pad_out), lambda i: (i, 0)),
        compiler_params=pltpu.CompilerParams(
            dimension_semantics=("parallel",)),  # v7x: shard batch over 2 TCs
    )(
        x_p,
        prepared["w1"], prepared["b1"],
        prepared["w2"], prepared["b2"],
        prepared["w3"], prepared["b3"],
        prepared["w4"], prepared["b4"],
    )
    return out_padded[:batch, :action_dim]


# ---------------------------------------------------------------------------
# Init + reference (matches the PyTorch layer shapes / default init scale).
# ---------------------------------------------------------------------------
def init_params(key, state_dim, action_dim):
    """PyTorch stores Linear weights as (out, in); we store the transpose
    (in, out) so the kernel computes y = x @ W + b."""
    dims = [(state_dim, 256), (256, 256), (256, 128), (128, action_dim)]
    params = {}
    for i, (fan_in, fan_out) in enumerate(dims, start=1):
        key, kw, kb = jax.random.split(key, 3)
        bound = 1.0 / (fan_in ** 0.5)
        params[f"w{i}"] = jax.random.uniform(
            kw, (fan_in, fan_out), jnp.float32, -bound, bound)
        params[f"b{i}"] = jax.random.uniform(
            kb, (fan_out,), jnp.float32, -bound, bound)
    return params


def _reference_forward(x, p, hidden_dtype=_HIDDEN_DTYPE):
    # Same bf16-weight / f32-accumulate / hidden_dtype-epilogue arithmetic as
    # the kernel.
    def mm(a, w):
        return jnp.dot(a.astype(jnp.bfloat16), w.astype(jnp.bfloat16),
                       preferred_element_type=jnp.float32)

    def layer(h, w, b):
        y = mm(h, w).astype(hidden_dtype) + b.astype(hidden_dtype)
        return jnp.maximum(y, 0.0).astype(jnp.float32)

    h = layer(x, p["w1"], p["b1"])
    h = layer(h, p["w2"], p["b2"])
    h = layer(h, p["w3"], p["b3"])
    return mm(h, p["w4"]) + p["b4"]


if __name__ == "__main__":
    # Pendulum: 3-dim state, discretized action space (e.g. 11 actions).
    state_dim, action_dim = 3, 11

    key = jax.random.PRNGKey(0)
    key, kx_small, kx_odd, kx_big = jax.random.split(key, 4)
    params = init_params(key, state_dim, action_dim)
    prepared = prepare_params(params, state_dim, action_dim)

    cases = (
        ("actor", 8, kx_small),    # single block, no padding
        ("odd", 37, kx_odd),       # single block, 3 padded rows sliced off
        ("train", 384, kx_big),    # two balanced 192-row tiles, zero padding
    )
    for name, batch, kx in cases:
        x = jax.random.normal(kx, (batch, state_dim), jnp.float32)
        out = jax.block_until_ready(
            qnetwork_forward(x, prepared, action_dim=action_dim))
        ref = _reference_forward(x, params)
        assert out.shape == (batch, action_dim), f"bad shape ({name})"
        assert jnp.allclose(out, ref, atol=2e-2, rtol=2e-2), \
            f"mismatch vs JAX reference ({name})"

    print("KERNEL_OK")
</pallas_src>

<mosaic_0001>
module attributes {stable_mosaic.version = 11 : i64} {
  func.func @_qnet_kernel(%arg0: i32, %arg1: memref<8x128xbf16, #tpu.memory_space<vmem>>, %arg2: memref<128x256xbf16, #tpu.memory_space<vmem>>, %arg3: memref<1x256xf32, #tpu.memory_space<vmem>>, %arg4: memref<256x256xbf16, #tpu.memory_space<vmem>>, %arg5: memref<1x256xf32, #tpu.memory_space<vmem>>, %arg6: memref<256x128xbf16, #tpu.memory_space<vmem>>, %arg7: memref<1x128xf32, #tpu.memory_space<vmem>>, %arg8: memref<128x128xbf16, #tpu.memory_space<vmem>>, %arg9: memref<1x128xf32, #tpu.memory_space<vmem>>, %arg10: memref<8x128xf32, #tpu.memory_space<vmem>>) attributes {dimension_semantics = [#tpu.dimension_semantics<parallel>], iteration_bounds = array<i64: 1>, scalar_prefetch = 0 : i64, scratch_operands = 0 : i64, tpu.core_type = #tpu.core_type<tc>, window_params = [{transform_indices = @transform_0, window_bounds = array<i64: 8, 128>}, {pipeline_mode = #tpu.pipeline_mode<synchronous>, transform_indices = @transform_1, window_bounds = array<i64: 128, 256>}, {pipeline_mode = #tpu.pipeline_mode<synchronous>, transform_indices = @transform_2, window_bounds = array<i64: 1, 256>}, {pipeline_mode = #tpu.pipeline_mode<synchronous>, transform_indices = @transform_3, window_bounds = array<i64: 256, 256>}, {pipeline_mode = #tpu.pipeline_mode<synchronous>, transform_indices = @transform_4, window_bounds = array<i64: 1, 256>}, {pipeline_mode = #tpu.pipeline_mode<synchronous>, transform_indices = @transform_5, window_bounds = array<i64: 256, 128>}, {pipeline_mode = #tpu.pipeline_mode<synchronous>, transform_indices = @transform_6, window_bounds = array<i64: 1, 128>}, {pipeline_mode = #tpu.pipeline_mode<synchronous>, transform_indices = @transform_7, window_bounds = array<i64: 128, 128>}, {pipeline_mode = #tpu.pipeline_mode<synchronous>, transform_indices = @transform_8, window_bounds = array<i64: 1, 128>}, {transform_indices = @transform_9, window_bounds = array<i64: 8, 128>}]} {
    %c0 = arith.constant 0 : index
    %c0_0 = arith.constant 0 : index
    %0 = vector.load %arg1[%c0, %c0_0] : memref<8x128xbf16, #tpu.memory_space<vmem>>, vector<8x128xbf16>
    %c0_1 = arith.constant 0 : index
    %c0_2 = arith.constant 0 : index
    %1 = vector.load %arg2[%c0_1, %c0_2] : memref<128x256xbf16, #tpu.memory_space<vmem>>, vector<128x256xbf16>
    %cst = arith.constant dense<0.000000e+00> : vector<8x256xf32>
    %2 = tpu.matmul %0, %1, %cst {dimension_numbers = #tpu.dot_dimension_numbers<[1], [0], [0], [1], [0, 0, 1, 1], [], []>} : vector<8x128xbf16>, vector<128x256xbf16>, vector<8x256xf32> -> vector<8x256xf32>
    %3 = arith.truncf %2 : vector<8x256xf32> to vector<8x256xbf16>
    %c0_3 = arith.constant 0 : index
    %c0_4 = arith.constant 0 : index
    %4 = vector.load %arg3[%c0_3, %c0_4] : memref<1x256xf32, #tpu.memory_space<vmem>>, vector<1x256xf32>
    %5 = arith.truncf %4 : vector<1x256xf32> to vector<1x256xbf16>
    %6 = vector.broadcast %5 : vector<1x256xbf16> to vector<8x256xbf16>
    %7 = arith.addf %3, %6 : vector<8x256xbf16>
    %cst_5 = arith.constant 0.000000e+00 : bf16
    %8 = vector.broadcast %cst_5 : bf16 to vector<8x256xbf16>
    %9 = arith.maximumf %7, %8 : vector<8x256xbf16>
    %c0_6 = arith.constant 0 : index
    %c0_7 = arith.constant 0 : index
    %10 = vector.load %arg4[%c0_6, %c0_7] : memref<256x256xbf16, #tpu.memory_space<vmem>>, vector<256x256xbf16>
    %cst_8 = arith.constant dense<0.000000e+00> : vector<8x256xf32>
    %11 = tpu.matmul %9, %10, %cst_8 {dimension_numbers = #tpu.dot_dimension_numbers<[1], [0], [0], [1], [0, 0, 1, 1], [], []>} : vector<8x256xbf16>, vector<256x256xbf16>, vector<8x256xf32> -> vector<8x256xf32>
    %12 = arith.truncf %11 : vector<8x256xf32> to vector<8x256xbf16>
    %c0_9 = arith.constant 0 : index
    %c0_10 = arith.constant 0 : index
    %13 = vector.load %arg5[%c0_9, %c0_10] : memref<1x256xf32, #tpu.memory_space<vmem>>, vector<1x256xf32>
    %14 = arith.truncf %13 : vector<1x256xf32> to vector<1x256xbf16>
    %15 = vector.broadcast %14 : vector<1x256xbf16> to vector<8x256xbf16>
    %16 = arith.addf %12, %15 : vector<8x256xbf16>
    %cst_11 = arith.constant 0.000000e+00 : bf16
    %17 = vector.broadcast %cst_11 : bf16 to vector<8x256xbf16>
    %18 = arith.maximumf %16, %17 : vector<8x256xbf16>
    %c0_12 = arith.constant 0 : index
    %c0_13 = arith.constant 0 : index
    %19 = vector.load %arg6[%c0_12, %c0_13] : memref<256x128xbf16, #tpu.memory_space<vmem>>, vector<256x128xbf16>
    %cst_14 = arith.constant dense<0.000000e+00> : vector<8x128xf32>
    %20 = tpu.matmul %18, %19, %cst_14 {dimension_numbers = #tpu.dot_dimension_numbers<[1], [0], [0], [1], [0, 0, 1, 1], [], []>} : vector<8x256xbf16>, vector<256x128xbf16>, vector<8x128xf32> -> vector<8x128xf32>
    %21 = arith.truncf %20 : vector<8x128xf32> to vector<8x128xbf16>
    %c0_15 = arith.constant 0 : index
    %c0_16 = arith.constant 0 : index
    %22 = vector.load %arg7[%c0_15, %c0_16] : memref<1x128xf32, #tpu.memory_space<vmem>>, vector<1x128xf32>
    %23 = arith.truncf %22 : vector<1x128xf32> to vector<1x128xbf16>
    %24 = vector.broadcast %23 : vector<1x128xbf16> to vector<8x128xbf16>
    %25 = arith.addf %21, %24 : vector<8x128xbf16>
    %cst_17 = arith.constant 0.000000e+00 : bf16
    %26 = vector.broadcast %cst_17 : bf16 to vector<8x128xbf16>
    %27 = arith.maximumf %25, %26 : vector<8x128xbf16>
    %c0_18 = arith.constant 0 : index
    %c0_19 = arith.constant 0 : index
    %28 = vector.load %arg8[%c0_18, %c0_19] : memref<128x128xbf16, #tpu.memory_space<vmem>>, vector<128x128xbf16>
    %cst_20 = arith.constant dense<0.000000e+00> : vector<8x128xf32>
    %29 = tpu.matmul %27, %28, %cst_20 {dimension_numbers = #tpu.dot_dimension_numbers<[1], [0], [0], [1], [0, 0, 1, 1], [], []>} : vector<8x128xbf16>, vector<128x128xbf16>, vector<8x128xf32> -> vector<8x128xf32>
    %c0_21 = arith.constant 0 : index
    %c0_22 = arith.constant 0 : index
    %30 = vector.load %arg9[%c0_21, %c0_22] : memref<1x128xf32, #tpu.memory_space<vmem>>, vector<1x128xf32>
    %31 = vector.broadcast %30 : vector<1x128xf32> to vector<8x128xf32>
    %32 = arith.addf %29, %31 : vector<8x128xf32>
    %c0_23 = arith.constant 0 : index
    %c0_24 = arith.constant 0 : index
    %33 = vector.load %arg10[%c0_23, %c0_24] : memref<8x128xf32, #tpu.memory_space<vmem>>, vector<8x128xf32>
    tpu.vector_store %arg10[%c0_23, %c0_24], %32 {strides = array<i32>} : memref<8x128xf32, #tpu.memory_space<vmem>>, vector<8x128xf32>,
    return
  }
  func.func @transform_0(%arg0: i32) -> (i32, i32) {
    %c0_i32 = arith.constant 0 : i32
    %c0_i32_0 = arith.constant 0 : i32
    return %arg0, %c0_i32 : i32, i32
  }
  func.func @transform_1(%arg0: i32) -> (i32, i32) {
    %c0_i32 = arith.constant 0 : i32
    %c0_i32_0 = arith.constant 0 : i32
    %c0_i32_1 = arith.constant 0 : i32
    return %c0_i32, %c0_i32_0 : i32, i32
  }
  func.func @transform_2(%arg0: i32) -> (i32, i32) {
    %c0_i32 = arith.constant 0 : i32
    %c0_i32_0 = arith.constant 0 : i32
    %c0_i32_1 = arith.constant 0 : i32
    return %c0_i32, %c0_i32_0 : i32, i32
  }
  func.func @transform_3(%arg0: i32) -> (i32, i32) {
    %c0_i32 = arith.constant 0 : i32
    %c0_i32_0 = arith.constant 0 : i32
    %c0_i32_1 = arith.constant 0 : i32
    return %c0_i32, %c0_i32_0 : i32, i32
  }
  func.func @transform_4(%arg0: i32) -> (i32, i32) {
    %c0_i32 = arith.constant 0 : i32
    %c0_i32_0 = arith.constant 0 : i32
    %c0_i32_1 = arith.constant 0 : i32
    return %c0_i32, %c0_i32_0 : i32, i32
  }
  func.func @transform_5(%arg0: i32) -> (i32, i32) {
    %c0_i32 = arith.constant 0 : i32
    %c0_i32_0 = arith.constant 0 : i32
    %c0_i32_1 = arith.constant 0 : i32
    return %c0_i32, %c0_i32_0 : i32, i32
  }
  func.func @transform_6(%arg0: i32) -> (i32, i32) {
    %c0_i32 = arith.constant 0 : i32
    %c0_i32_0 = arith.constant 0 : i32
    %c0_i32_1 = arith.constant 0 : i32
    return %c0_i32, %c0_i32_0 : i32, i32
  }
  func.func @transform_7(%arg0: i32) -> (i32, i32) {
    %c0_i32 = arith.constant 0 : i32
    %c0_i32_0 = arith.constant 0 : i32
    %c0_i32_1 = arith.constant 0 : i32
    return %c0_i32, %c0_i32_0 : i32, i32
  }
  func.func @transform_8(%arg0: i32) -> (i32, i32) {
    %c0_i32 = arith.constant 0 : i32
    %c0_i32_0 = arith.constant 0 : i32
    %c0_i32_1 = arith.constant 0 : i32
    return %c0_i32, %c0_i32_0 : i32, i32
  }
  func.func @transform_9(%arg0: i32) -> (i32, i32) {
    %c0_i32 = arith.constant 0 : i32
    %c0_i32_0 = arith.constant 0 : i32
    return %arg0, %c0_i32 : i32, i32
  }
}

</mosaic_0001>

<bundles_post_ra>
// kernel: qnetwork_forward.1
= control target key start
LH: loop header
LB: loop body
LE: loop exit
PB: predicated region body
PF: predicated region fallthrough
CT: control target
= control target key end

     0   :  { %14 = vsyncpa [#allocation3], 0  ;;  %s1346_s0 = inlined_call_operand.vmem [shape: bf16[8,128], index: 0, kind: input, shape index: {}]   ;;  %s1347_s1 = inlined_call_operand.hbm [shape: bf16[128,256], index: 1, kind: input, shape index: {}]   ;;  %s1348_s2 = inlined_call_operand.vmem [shape: f32[1,256], index: 2, kind: input, shape index: {}]   ;;  %s1349_s3 = inlined_call_operand.hbm [shape: bf16[256,256], index: 3, kind: input, shape index: {}]   ;;  %s1350_s4 = inlined_call_operand.vmem [shape: f32[1,256], index: 4, kind: input, shape index: {}]   ;;  %s1351_s5 = inlined_call_operand.hbm [shape: bf16[256,128], index: 5, kind: input, shape index: {}]   ;;  %s1352_s6 = inlined_call_operand.vmem [shape: f32[1,128], index: 6, kind: input, shape index: {}]   ;;  %s1353_s7 = inlined_call_operand.hbm [shape: bf16[128,128], index: 7, kind: input, shape index: {}]   ;;  %s1354_s8 = inlined_call_operand.vmem [shape: f32[1,128], index: 8, kind: input, shape index: {}]   ;;  %s1355_s9 = inlined_call_operand.hbm [shape: f32[8,128], index: 9, kind: output, shape index: {}]  }
   0x1   :  { %15 = vsyncpa [#allocation6], 0 }
   0x2   :  { %16 = vsyncpa [#allocation9], 0 }
   0x3   :  { %17 = vsyncpa [#allocation4], 0  ;;  %s1187_s30 = smov [#allocation5]   ;;  %s1188_s11 = smov [#allocation2]  }
   0x4   :  { %s39_s10 = sshll.u32 %s1187_s30, 4  ;;  %s25_s12 = sshll.u32 %s1188_s11, 4  ;;  %s40_s10 = int_to_ptr.vmem [resolvable:$true] %s39_s10  ;;  %s1249_s12 = int_to_ptr.vmem [resolvable:$true] %s25_s12 }
   0x5   :  { %s1069_s15 = scalar_lea.hbm %s1349_s3, 4096 }
   0x6   :  { %p1070_p0 = scmp.ne.s32.totalorder %s1349_s3, %s1069_s15  ;;  %p1073_p1 = scmp.lt.u32.totalorder %s1069_s15, %s1349_s3 }
   0x8   :  { %p1075_p2 = pnand %p1073_p1, %p1070_p0 }
   0xa   :  { %1078 = shalt.err (!%p1075_p2)
}
   0xb   :  { %s1079_s20 = scalar_lea.vmem %s40_s10, 4096  ;;  %p1084_p4 = scmp.lt.s32.totalorder %s40_s10, %s40_s10 }
   0xc   :  { %p1080_p3 = scmp.ne.s32.totalorder %s40_s10, %s1079_s20  ;;  %p1085_p5 = scmp.lt.s32.totalorder %s1079_s20, %s1079_s20 }
   0xe   :  { %p1086_p6 = por %p1085_p5, %p1084_p4 }
  0x10   :  { %p1087_p7 = pnand %p1086_p6, %p1080_p3 }
  0x12   :  { %1090 = shalt.err (!%p1087_p7)
}
  0x13   :  { %s1189_s21 = smov 128   ;;  %s1190_s22 = smov 8  }
  0x14   :  { %45 = dma.hbm_to_vmem [thread:$0]  %s1349_s3, 4096, %s40_s10, [#allocation6], %s1189_s21, %s1189_s21, %s1190_s22  }
  0x15   :  { %s1091_s27 = scalar_lea.hbm %s1347_s1, 2048 }
  0x16   :  { %p1092_p8 = scmp.ne.s32.totalorder %s1347_s1, %s1091_s27  ;;  %p1095_p9 = scmp.lt.u32.totalorder %s1091_s27, %s1347_s1 }
  0x18   :  { %p1097_p10 = pnand %p1095_p9, %p1092_p8 }
  0x1a   :  { %1100 = shalt.err (!%p1097_p10)
}
  0x1b   :  { %s1101_s13 = scalar_lea.vmem %s1249_s12, 2048  ;;  %p1106_p12 = scmp.lt.s32.totalorder %s1249_s12, %s1249_s12 }
  0x1c   :  { %p1102_p11 = scmp.ne.s32.totalorder %s1249_s12, %s1101_s13  ;;  %p1107_p13 = scmp.lt.s32.totalorder %s1101_s13, %s1101_s13 }
  0x1e   :  { %p1108_p0 = por %p1107_p13, %p1106_p12 }
  0x20   :  { %p1109_p1 = pnand %p1108_p0, %p1102_p11 }
  0x22   :  { %1112 = shalt.err (!%p1109_p1)
}
  0x23   :  { %31 = dma.hbm_to_vmem [thread:$0]  %s1347_s1, 2048, %s1249_s12, [#allocation3], %s1189_s21, %s1189_s21, %s1190_s22  }
  0x24   :  { %s1191_s14 = smov [#allocation7]   ;;  %s1113_s18 = scalar_lea.hbm %s1351_s5, 2048 }
  0x25   :  { %s53_s15 = sshll.u32 %s1191_s14, 4  ;;  %p1114_p2 = scmp.ne.s32.totalorder %s1351_s5, %s1113_s18  ;;  %s54_s15 = int_to_ptr.vmem [resolvable:$true] %s53_s15 }
  0x26   :  { %p1117_p3 = scmp.lt.u32.totalorder %s1113_s18, %s1351_s5 }
  0x28   :  { %p1119_p4 = pnand %p1117_p3, %p1114_p2 }
  0x2a   :  { %1122 = shalt.err (!%p1119_p4)
}
  0x2b   :  { %s1123_s25 = scalar_lea.vmem %s54_s15, 2048  ;;  %p1128_p6 = scmp.lt.s32.totalorder %s54_s15, %s54_s15 }
  0x2c   :  { %p1124_p5 = scmp.ne.s32.totalorder %s54_s15, %s1123_s25  ;;  %p1129_p7 = scmp.lt.s32.totalorder %s1123_s25, %s1123_s25 }
  0x2e   :  { %p1130_p8 = por %p1129_p7, %p1128_p6 }
  0x30   :  { %p1131_p9 = pnand %p1130_p8, %p1124_p5 }
  0x32   :  { %1134 = shalt.err (!%p1131_p9)
}
  0x33   :  { %s1192_s1 = smov 64   ;;  %s1193_s12 = smov 4  }
  0x34   :  { %59 = dma.hbm_to_vmem [thread:$0]  %s1351_s5, 2048, %s54_s15, [#allocation6], %s1192_s1, %s1192_s1, %s1193_s12  }
  0x35   :  { %s1194_s26 = smov [#allocation8]   ;;  %s1135_s30 = scalar_lea.hbm %s1353_s7, 1024 }
  0x36   :  { %s67_s27 = sshll.u32 %s1194_s26, 4  ;;  %p1136_p10 = scmp.ne.s32.totalorder %s1353_s7, %s1135_s30  ;;  %s68_s27 = int_to_ptr.vmem [resolvable:$true] %s67_s27 }
  0x37   :  { %p1139_p11 = scmp.lt.u32.totalorder %s1135_s30, %s1353_s7 }
  0x39   :  { %p1141_p12 = pnand %p1139_p11, %p1136_p10 }
  0x3b   :  { %1144 = shalt.err (!%p1141_p12)
}
  0x3c   :  { %s1145_s14 = scalar_lea.vmem %s68_s27, 1024  ;;  %p1150_p0 = scmp.lt.s32.totalorder %s68_s27, %s68_s27 }
  0x3d   :  { %p1146_p13 = scmp.ne.s32.totalorder %s68_s27, %s1145_s14  ;;  %p1151_p1 = scmp.lt.s32.totalorder %s1145_s14, %s1145_s14 }
  0x3f   :  { %p1152_p2 = por %p1151_p1, %p1150_p0 }
  0x41   :  { %p1153_p3 = pnand %p1152_p2, %p1146_p13 }
  0x43   :  { %1156 = shalt.err (!%p1153_p3)
}
  0x44   :  { %73 = dma.hbm_to_vmem [thread:$0]  %s1353_s7, 1024, %s68_s27, [#allocation9], %s1192_s1, %s1192_s1, %s1193_s12  }
  0x45   :  { %1179 = dma.done.wait [#allocation3], 2048  }
  0x46   :  { %1180 = vsyncadd [#allocation3], 4294965248 }
  0x47   :  { %1181 = dma.done.wait [#allocation6], 6144  }
  0x48   :  { %1182 = vsyncadd [#allocation6], 4294961152 }
  0x49   :  { %1183 = dma.done.wait [#allocation9], 1024  }
  0x4a   :  { %1184 = vsyncadd [#allocation9], 4294966272  ;;  %v1195_v0 = vmov 0   ;;  %v973_v1 = vld [vmem:[#allocation2 + $0x4] ss:$8 sps:$4 sm:$0xff]   ;;  %v1049_v54 = vld [vmem:[#allocation7 + $0x50] sm:$0xff]   ;;  %v231_v62 = vlaneseq }
  0x4b   :  { %218 = vmatprep.mubr.bf16.mxu0 %v1195_v0  ;;  %v975_v2 = vld [vmem:[#allocation2] ss:$8 sps:$4 sm:$0xff]   ;;  %186 = vmatprep.subr.bf16.mxu0 %v973_v1  ;;  %v976_v3 = vld [vmem:[#allocation2 + $0x14] ss:$8 sps:$4 sm:$0xff]   ;;  %v978_v4 = vld [vmem:[#allocation2 + $0x10] ss:$8 sps:$4 sm:$0xff]  }
  0x4c   :  { %187 = vmatpush1.bf16.msra.mxu0 %v975_v2  ;;  %v979_v5 = vld [vmem:[#allocation2 + $0x24] ss:$8 sps:$4 sm:$0xff]   ;;  %v981_v6 = vld [vmem:[#allocation2 + $0x20] ss:$8 sps:$4 sm:$0xff]   ;;  %v982_v7 = vld [vmem:[#allocation2 + $0x34] ss:$8 sps:$4 sm:$0xff]  }
  0x4d   :  { %188 = vmatprep.subr.bf16.mxu0 %v976_v3  ;;  %v984_v8 = vld [vmem:[#allocation2 + $0x30] ss:$8 sps:$4 sm:$0xff]   ;;  %v985_v9 = vld [vmem:[#allocation2 + $0x44] ss:$8 sps:$4 sm:$0xff]   ;;  %v999_v11 = vld [vmem:[#allocation5] ss:$8 sps:$4 sm:$0xff]  }
  0x4e   :  { %v997_v10 = vld [vmem:[#allocation5 + $0x4] ss:$8 sps:$4 sm:$0xff]   ;;  %v1000_v12 = vld [vmem:[#allocation5 + $0x14] ss:$8 sps:$4 sm:$0xff]   ;;  %v987_v13 = vld [vmem:[#allocation2 + $0x40] ss:$8 sps:$4 sm:$0xff]  }
  0x4f   :  { %453 = vmatprep.subr.bf16.mxu1 %v997_v10  ;;  %v1002_v14 = vld [vmem:[#allocation5 + $0x10] ss:$8 sps:$4 sm:$0xff]   ;;  %v1003_v15 = vld [vmem:[#allocation5 + $0x24] ss:$8 sps:$4 sm:$0xff]   ;;  %v988_v16 = vld [vmem:[#allocation2 + $0x54] ss:$8 sps:$4 sm:$0xff]  }
  0x50   :  { %189 = vmatpush1.bf16.msra.mxu0 %v978_v4  ;;  %454 = vmatpush1.bf16.msra.mxu1 %v999_v11  ;;  %v990_v17 = vld [vmem:[#allocation2 + $0x50] ss:$8 sps:$4 sm:$0xff]   ;;  %v1005_v18 = vld [vmem:[#allocation5 + $0x20] ss:$8 sps:$4 sm:$0xff]   ;;  %v1006_v19 = vld [vmem:[#allocation5 + $0x34] ss:$8 sps:$4 sm:$0xff]  }
  0x51   :  { %190 = vmatprep.subr.bf16.mxu0 %v979_v5  ;;  %455 = vmatprep.subr.bf16.mxu1 %v1000_v12  ;;  %v991_v20 = vld [vmem:[#allocation2 + $0x64] ss:$8 sps:$4 sm:$0xff]   ;;  %v993_v21 = vld [vmem:[#allocation2 + $0x60] ss:$8 sps:$4 sm:$0xff]   ;;  %v1008_v22 = vld [vmem:[#allocation5 + $0x30] ss:$8 sps:$4 sm:$0xff]  }
  0x52   :  { %v1009_v23 = vld [vmem:[#allocation5 + $0x44] ss:$8 sps:$4 sm:$0xff]   ;;  %v994_v24 = vld [vmem:[#allocation2 + $0x74] ss:$8 sps:$4 sm:$0xff]   ;;  %v996_v25 = vld [vmem:[#allocation2 + $0x70] ss:$8 sps:$4 sm:$0xff]  }
  0x53   :  { %v1011_v26 = vld [vmem:[#allocation5 + $0x40] ss:$8 sps:$4 sm:$0xff]   ;;  %v1012_v27 = vld [vmem:[#allocation5 + $0x54] ss:$8 sps:$4 sm:$0xff]   ;;  %v1014_v29 = vld [vmem:[#allocation5 + $0x50] ss:$8 sps:$4 sm:$0xff]  }
  0x54   :  { %191 = vmatpush1.bf16.msra.mxu0 %v981_v6  ;;  %456 = vmatpush1.bf16.msra.mxu1 %v1002_v14  ;;  %v89_v28 = vld [vmem:[%s1346_s0] sm:$0xf]  ;;  %v1015_v30 = vld [vmem:[#allocation5 + $0x64] ss:$8 sps:$4 sm:$0xff]   ;;  %v1018_v32 = vld [vmem:[#allocation5 + $0x74] ss:$8 sps:$4 sm:$0xff]  }
  0x55   :  { %192 = vmatprep.subr.bf16.mxu0 %v982_v7  ;;  %457 = vmatprep.subr.bf16.mxu1 %v1003_v15  ;;  %v1017_v31 = vld [vmem:[#allocation5 + $0x60] ss:$8 sps:$4 sm:$0xff]   ;;  %v1020_v33 = vld [vmem:[#allocation5 + $0x70] ss:$8 sps:$4 sm:$0xff]   ;;  %v1021_v34 = vld [vmem:[#allocation5 + $0x84] ss:$8 sps:$4 sm:$0xff]  }
  0x56   :  { %v1023_v35 = vld [vmem:[#allocation5 + $0x80] ss:$8 sps:$4 sm:$0xff]   ;;  %v1024_v36 = vld [vmem:[#allocation5 + $0x94] ss:$8 sps:$4 sm:$0xff]   ;;  %v1026_v37 = vld [vmem:[#allocation5 + $0x90] ss:$8 sps:$4 sm:$0xff]  }
  0x57   :  { %v1027_v38 = vld [vmem:[#allocation5 + $0xa4] ss:$8 sps:$4 sm:$0xff]   ;;  %v1029_v39 = vld [vmem:[#allocation5 + $0xa0] ss:$8 sps:$4 sm:$0xff]   ;;  %v1030_v40 = vld [vmem:[#allocation5 + $0xb4] ss:$8 sps:$4 sm:$0xff]  }
  0x58   :  { %193 = vmatpush1.bf16.msra.mxu0 %v984_v8  ;;  %458 = vmatpush1.bf16.msra.mxu1 %v1005_v18  ;;  %v1032_v41 = vld [vmem:[#allocation5 + $0xb0] ss:$8 sps:$4 sm:$0xff]   ;;  %v1033_v42 = vld [vmem:[#allocation5 + $0xc4] ss:$8 sps:$4 sm:$0xff]   ;;  %v1035_v43 = vld [vmem:[#allocation5 + $0xc0] ss:$8 sps:$4 sm:$0xff]  }
  0x59   :  { %194 = vmatprep.subr.bf16.mxu0 %v985_v9  ;;  %459 = vmatprep.subr.bf16.mxu1 %v1006_v19  ;;  %v1036_v44 = vld [vmem:[#allocation5 + $0xd4] ss:$8 sps:$4 sm:$0xff]   ;;  %v1038_v45 = vld [vmem:[#allocation5 + $0xd0] ss:$8 sps:$4 sm:$0xff]   ;;  %v1039_v46 = vld [vmem:[#allocation5 + $0xe4] ss:$8 sps:$4 sm:$0xff]  }
  0x5a   :  { %v1041_v47 = vld [vmem:[#allocation5 + $0xe0] ss:$8 sps:$4 sm:$0xff]   ;;  %v1042_v48 = vld [vmem:[#allocation5 + $0xf4] ss:$8 sps:$4 sm:$0xff]   ;;  %v1044_v49 = vld [vmem:[#allocation5 + $0xf0] ss:$8 sps:$4 sm:$0xff]  }
  0x5b   :  { %v1045_v50 = vld [vmem:[#allocation7 + $0x40] sm:$0xff]   ;;  %v1047_v52 = vld [vmem:[#allocation7 + $0x48] sm:$0xff]   ;;  %v1050_v55 = vld [vmem:[#allocation7 + $0x10] sm:$0xff]   ;;  %v232_v63 = vshrl.u32 %v231_v62, 7  ;;  %vm1197_vm0 = vmmov 0   ;;  %s1198_s24 = smov [#allocation10]  }
  0x5c   :  { %195 = vmatpush1.bf16.msra.mxu0 %v987_v13  ;;  %460 = vmatpush1.bf16.msra.mxu1 %v1008_v22  ;;  %v1046_v51 = vld [vmem:[#allocation7] sm:$0xff]   ;;  %v1048_v53 = vld [vmem:[#allocation7 + $0x8] sm:$0xff]   ;;  %v1051_v56 = vld [vmem:[#allocation7 + $0x58] sm:$0xff]  }
  0x5d   :  { %196 = vmatprep.subr.bf16.mxu0 %v988_v16  ;;  %461 = vmatprep.subr.bf16.mxu1 %v1009_v23  ;;  %v1052_v57 = vld [vmem:[#allocation7 + $0x18] sm:$0xff]   ;;  %v1053_v58 = vld [vmem:[#allocation7 + $0x60] sm:$0xff]   ;;  %v1055_v60 = vld [vmem:[#allocation7 + $0x68] sm:$0xff]   ;;  %v1308_v1 = vsub.s32 0, %v232_v63  ;;  %v237_v3 = vsub.s32 1, %v232_v63 }
  0x5e   :  { %v1054_v59 = vld [vmem:[#allocation7 + $0x20] sm:$0xff]   ;;  %v1056_v61 = vld [vmem:[#allocation7 + $0x28] sm:$0xff]   ;;  %v1057_v22 = vld [vmem:[#allocation7 + $0x70] sm:$0xff]  }
  0x5f   :  { %v229_v2 = vld [vmem:[%s1348_s2] sm:$0x3]  ;;  %v1058_v23 = vld [vmem:[#allocation7 + $0x30] sm:$0xff]  }
  0x60   :  { %197 = vmatpush1.bf16.msra.mxu0 %v990_v17  ;;  %462 = vmatpush1.bf16.msra.mxu1 %v1011_v26  ;;  %v234_v4 = vrot.slane %v229_v2, %v1308_v1  ;;  %v238_v5 = vrot.slane %v229_v2, %v237_v3  ;;  %v1196_v26 = vmov 0.0  }
  0x61   :  { %198 = vmatprep.subr.bf16.mxu0 %v991_v20  ;;  %463 = vmatprep.subr.bf16.mxu1 %v1012_v27  ;;  %v496_v27 = vld [vmem:[%s1350_s4] sm:$0x3] }
  0x62   :  { %v241_v6 = vpack.c.bf16 %v234_v4, %v234_v4  ;;  %v242_v7 = vpack.c.bf16 %v238_v5, %v238_v5  ;;  %v901_v4 = vld [vmem:[%s1354_s8] ss:$0 sm:$0xff] }
  0x64   :  { %199 = vmatpush1.bf16.msra.mxu0 %v993_v21  ;;  %464 = vmatpush1.bf16.msra.mxu1 %v1014_v29  ;;  %v244_v8 = vpack.i.b16 %v241_v6, %v241_v6  ;;  %v251_v9 = vpack.i.b16 %v242_v7, %v242_v7  ;;  %v505_v29 = vrot.slane %v496_v27, %v237_v3 }
  0x65   :  { %200 = vmatprep.subr.bf16.mxu0 %v994_v24  ;;  %465 = vmatprep.subr.bf16.mxu1 %v1015_v30  ;;  %v1059_v24 = vld [vmem:[#allocation7 + $0x78] sm:$0xff]  }
  0x66   :  { %v249_v10 = vrot.slane %v244_v8, %v1308_v1  ;;  %v256_v12 = vrot.slane %v251_v9, %v1308_v1 }
  0x68   :  { %201 = vmatpush1.bf16.msra.mxu0 %v996_v25  ;;  %466 = vmatpush1.bf16.msra.mxu1 %v1017_v31  ;;  %v1060_v25 = vld [vmem:[#allocation7 + $0x38] sm:$0xff]   ;;  %v509_v31 = vpack.c.bf16 %v505_v29, %v505_v29 }
  0x69   :  { %467 = vmatprep.subr.bf16.mxu1 %v1018_v32  ;;  %910 = vmatprep.subr.bf16.mxu0 %v1045_v50  ;;  %v1065_v50 = vld [vmem:[#allocation8 + $0x20] sm:$0xff]  }
  0x6b   :  { %219 = vmatmul.mubr.bf16.vlgmr.msra.gmra.mrb[0].mxu0 %v89_v28  ;;  %v501_v28 = vrot.slane %v496_v27, %v1308_v1 }
  0x6c   :  { %468 = vmatpush1.bf16.msra.mxu1 %v1020_v33  ;;  %911 = vmatpush3.bf16.msra.mxu0 %v1046_v51  ;;  %v518_v33 = vpack.i.b16 %v509_v31, %v509_v31  ;;  %v1066_v51 = vld [vmem:[#allocation8 + $0x28] sm:$0xff]  }
  0x6d   :  { %469 = vmatprep.subr.bf16.mxu1 %v1021_v34  ;;  %912 = vmatprep.subr.bf16.mxu0 %v1047_v52  ;;  %v508_v30 = vpack.c.bf16 %v501_v28, %v501_v28  ;;  %v1067_v52 = vld [vmem:[#allocation8 + $0x30] sm:$0xff]  }
  0x6f   :  { %v511_v32 = vpack.i.b16 %v508_v30, %v508_v30 }
  0x70   :  { %470 = vmatpush1.bf16.msra.mxu1 %v1023_v35  ;;  %913 = vmatpush3.bf16.msra.mxu0 %v1048_v53  ;;  %v1068_v53 = vld [vmem:[#allocation8 + $0x38] sm:$0xff]  }
  0x71   :  { %471 = vmatprep.subr.bf16.mxu1 %v1024_v36  ;;  %914 = vmatprep.subr.bf16.mxu0 %v1049_v54  ;;  %v516_v34 = vrot.slane %v511_v32, %v1308_v1  ;;  %v523_v36 = vrot.slane %v518_v33, %v1308_v1  ;;  %v697_v54 = vld [vmem:[%s1352_s6] sm:$0x1]  ;;  %s826_s6 = sshll.u32 %s1198_s24, 4  ;;  %s827_s6 = int_to_ptr.vmem [resolvable:$true] %s826_s6 }
  0x72   :  { %s1157_s25 = scalar_lea.vmem %s827_s6, 128  ;;  %p1162_p5 = scmp.lt.s32.totalorder %s827_s6, %s827_s6 }
  0x73   :  { %p1158_p4 = scmp.ne.s32.totalorder %s827_s6, %s1157_s25  ;;  %p1163_p6 = scmp.lt.s32.totalorder %s1157_s25, %s1157_s25 }
  0x74   :  { %472 = vmatpush1.bf16.msra.mxu1 %v1026_v37  ;;  %915 = vmatpush3.bf16.msra.mxu0 %v1050_v55  ;;  %v698_v55 = vpack.c.bf16 %v697_v54, %v697_v54 }
  0x75   :  { %473 = vmatprep.subr.bf16.mxu1 %v1027_v38  ;;  %916 = vmatprep.subr.bf16.mxu0 %v1051_v56  ;;  %p1164_p7 = por %p1163_p6, %p1162_p5 }
  0x76   :  { %v700_v56 = vpack.i.b16 %v698_v55, %v698_v55 }
  0x77   :  { %p1165_p8 = pnand %p1164_p7, %p1158_p4 }
  0x78   :  { %474 = vmatpush1.bf16.msra.mxu1 %v1029_v39  ;;  %917 = vmatpush3.bf16.msra.mxu0 %v1052_v57 }
  0x79   :  { %475 = vmatprep.subr.bf16.mxu1 %v1030_v40  ;;  %918 = vmatprep.subr.bf16.mxu0 %v1053_v58 }
  0x7c   :  { %476 = vmatpush1.bf16.msra.mxu1 %v1032_v41  ;;  %919 = vmatpush3.bf16.msra.mxu0 %v1054_v59 }
  0x7d   :  { %477 = vmatprep.subr.bf16.mxu1 %v1033_v42  ;;  %920 = vmatprep.subr.bf16.mxu0 %v1055_v60  ;;  %v705_v60 = vrot.slane %v700_v56, %v1308_v1 }
  0x80   :  { %478 = vmatpush1.bf16.msra.mxu1 %v1035_v43  ;;  %921 = vmatpush3.bf16.msra.mxu0 %v1056_v61 }
  0x81   :  { %479 = vmatprep.subr.bf16.mxu1 %v1036_v44  ;;  %922 = vmatprep.subr.bf16.mxu0 %v1057_v22 }
  0x84   :  { %480 = vmatpush1.bf16.msra.mxu1 %v1038_v45  ;;  %923 = vmatpush3.bf16.msra.mxu0 %v1058_v23  ;;  %v1061_v45 = vld [vmem:[#allocation8] sm:$0xff]  }
  0x85   :  { %481 = vmatprep.subr.bf16.mxu1 %v1039_v46  ;;  %924 = vmatprep.subr.bf16.mxu0 %v1059_v24 }
  0x88   :  { %482 = vmatpush1.bf16.msra.mxu1 %v1041_v47  ;;  %925 = vmatpush3.bf16.msra.mxu0 %v1060_v25  ;;  %v1062_v47 = vld [vmem:[#allocation8 + $0x8] sm:$0xff]  }
  0x89   :  { %483 = vmatprep.subr.bf16.mxu1 %v1042_v48  ;;  %941 = vmatprep.subr.bf16.mxu0 %v1196_v26  ;;  %v1063_v48 = vld [vmem:[#allocation8 + $0x10] sm:$0xff]  }
  0x8c   :  { %484 = vmatpush1.bf16.msra.mxu1 %v1044_v49  ;;  %v1064_v49 = vld [vmem:[#allocation8 + $0x18] sm:$0xff]  }
 0x13e   :  { %v220_v11 = vpop.f32.mrb[0].mxu0 }
 0x13f   :  { %v227_v13 = vpack.c.bf16 %v220_v11, %v220_v11  ;;  %v222_v14 = vpop.f32.mrb[1].mxu0 }
 0x140   :  { %v228_v15 = vpack.c.bf16 %v222_v14, %v222_v14  ;;  %v224_v16 = vpop.f32.mrb[2].mxu0 }
 0x141   :  { %v257_v17 = vadd.bf16 %v249_v10, %v227_v13  ;;  %v225_v18 = vpop.f32.mrb[3].mxu0 }
 0x142   :  { %v258_v19 = vadd.bf16 %v256_v12, %v228_v15 }
 0x143   :  { %v259_v21 = vmax.bf16 %v1195_v0, %v257_v17 }
 0x144   :  { %v260_v20 = vmax.bf16 %v1195_v0, %v258_v19 }
 0x146   :  { %485 = vmatprep.mubr.bf16.mxu1 %v260_v20 }
 0x147   :  { %486 = vmatmul.mubr.bf16.vlgmr.msra.gmra.mrb[0].mxu1 %v259_v21 }
 0x21a   :  { %v487_v35 = vpop.f32.mrb[0].mxu1 }
 0x21b   :  { %v494_v37 = vpack.c.bf16 %v487_v35, %v487_v35  ;;  %v489_v38 = vpop.f32.mrb[1].mxu1 }
 0x21c   :  { %v495_v39 = vpack.c.bf16 %v489_v38, %v489_v38  ;;  %v491_v40 = vpop.f32.mrb[2].mxu1 }
 0x21d   :  { %v524_v41 = vadd.bf16 %v516_v34, %v494_v37  ;;  %v492_v42 = vpop.f32.mrb[3].mxu1 }
 0x21e   :  { %v525_v43 = vadd.bf16 %v523_v36, %v495_v39 }
 0x21f   :  { %v526_v46 = vmax.bf16 %v1195_v0, %v524_v41 }
 0x220   :  { %v527_v44 = vmax.bf16 %v1195_v0, %v525_v43 }
 0x222   :  { %688 = vmatprep.mubr.bf16.mxu0 %v527_v44 }
 0x223   :  { %689 = vmatmul.mubr.bf16.vlgmr.msra.gmra.mrb[4].mxu0 %v526_v46 }
 0x224   :  { %942 = vmatpush3.bf16.msra.mxu0 %v1061_v45  ;;  %957 = vmatprep.mubr.msk.bf16.mxu0 %vm1197_vm0, %v1196_v26 }
 0x225   :  { %943 = vmatprep.subr.bf16.mxu0 %v1196_v26 }
 0x228   :  { %944 = vmatpush3.bf16.msra.mxu0 %v1062_v47 }
 0x229   :  { %945 = vmatprep.subr.bf16.mxu0 %v1196_v26 }
 0x22c   :  { %946 = vmatpush3.bf16.msra.mxu0 %v1063_v48 }
 0x22d   :  { %947 = vmatprep.subr.bf16.mxu0 %v1196_v26 }
 0x230   :  { %948 = vmatpush3.bf16.msra.mxu0 %v1064_v49 }
 0x231   :  { %949 = vmatprep.subr.bf16.mxu0 %v1196_v26 }
 0x234   :  { %950 = vmatpush3.bf16.msra.mxu0 %v1065_v50 }
 0x235   :  { %951 = vmatprep.subr.bf16.mxu0 %v1196_v26 }
 0x238   :  { %952 = vmatpush3.bf16.msra.mxu0 %v1066_v51 }
 0x239   :  { %953 = vmatprep.subr.bf16.mxu0 %v1196_v26 }
 0x23c   :  { %954 = vmatpush3.bf16.msra.mxu0 %v1067_v52 }
 0x23d   :  { %955 = vmatprep.subr.bf16.mxu0 %v1196_v26 }
 0x240   :  { %956 = vmatpush3.bf16.msra.mxu0 %v1068_v53 }
 0x2f6   :  { %v926_v57 = vpop.f32.mrb[4].mxu0 }
 0x2f7   :  { %v927_v58 = vpop.f32.mrb[5].mxu0 }
 0x2f8   :  { %v928_v59 = vadd.f32 %v927_v58, %v926_v57  ;;  %v929_v61 = vpop.f32.mrb[6].mxu0 }
 0x2f9   :  { %v930_v62 = vpop.f32.mrb[7].mxu0 }
 0x2fa   :  { %v696_v63 = vpack.c.bf16 %v928_v59, %v928_v59 }
 0x2fc   :  { %v706_v2 = vadd.bf16 %v705_v60, %v696_v63 }
 0x2fe   :  { %v707_v3 = vmax.bf16 %v1195_v0, %v706_v2 }
 0x300   :  { %958 = vmatmul.mubr.bf16.vlgmr.msra.gmra.mrb[8].mxu0 %v707_v3 }
 0x3d3   :  { %v813_v5 = vpop.f32.mrb[8].mxu0 }
 0x3d4   :  { %v814_v6 = vadd.f32 %v901_v4, %v813_v5  ;;  %v959_v7 = vpop.f32.mrb[9].mxu0 }
 0x3d5   :  { %v816_v8 = vpop.f32.mrb[10].mxu0 }
 0x3d6   :  { %819 = vst [vmem:[#allocation10] sm:$0xff] %v814_v6  ;;  %v960_v1 = vpop.f32.mrb[11].mxu0 }
 0x3d7   :  { %1168 = shalt.err (!%p1165_p8)
}
 0x3d8   :  { %s1169_s8 = scalar_lea.hbm %s1355_s9, 128 }
 0x3d9   :  { %p1170_p9 = scmp.ne.s32.totalorder %s1355_s9, %s1169_s8  ;;  %p1173_p10 = scmp.lt.u32.totalorder %s1169_s8, %s1355_s9 }
 0x3db   :  { %p1175_p11 = pnand %p1173_p10, %p1170_p9 }
 0x3dd   :  { %1178 = shalt.err (!%p1175_p11)
}
 0x3de   :  { %829 = dma.vmem_to_hbm [thread:$0]  %s827_s6, 128, %s1355_s9, [#allocation4]  }
 0x3df   :  { %1185 = dma.done.wait [#allocation4], 128  }
 0x3e0   :  { %1186 = vsyncadd [#allocation4], 4294967168 }
 0x3e1   :  { %833 = vsyncpa [#allocation3], 1 }
 0x3e2   :  { %834 = vsyncpa [#allocation6], 1 }
 0x3e3   :  { %835 = vsyncpa [#allocation9], 1 }
 0x3e4   :  { %836 = vsyncpa [#allocation4], 1 }

</bundles_post_ra>
